<compile_context>
chip_gen: v7x
topology: tpu7x:2x2x1
jax: 0.10.0
libtpu: 0.0.40
codegen_flags: <defaults>
</compile_context>

<pallas_src>
import math

import jax
import jax.numpy as jnp
from jax.experimental import pallas as pl
from jax.experimental.pallas import tpu as pltpu

N_STEPS = 5
ORDER = 1                      # unused in forward (matches PyTorch module)
OUT_SCALING = 0.00012
CLAMP_MIN = 1e-32

_N1 = float(N_STEPS - 1)
_INV_N1 = 1.0 / (N_STEPS - 1)  # 0.25 exactly (power of two) -> bit-exact vs divide

_LANES = 128
_SUBLANES = 8
_ROW_TILE_MAX = 8192           # 8192 x 128 f32 = 4 MiB per block
_VMEM_LIMIT_BYTES = 32 * 1024 * 1024   # 4 double-buffered 4 MiB blocks + headroom


def _safety_kernel(x_ref, o_ref):
    # Math in f32, cast to the output dtype only on store.
    x = x_ref[...].astype(jnp.float32)
    # stairs(x): round-half-to-even matches torch.round.
    stairs = jnp.round(jnp.float32(_N1) * x) * jnp.float32(_INV_N1)
    out = jnp.maximum(stairs * jnp.float32(OUT_SCALING), jnp.float32(CLAMP_MIN))
    o_ref[...] = out.astype(o_ref.dtype)


def _tail_forward(x):
    """Same math as the kernel, plain jnp, for the <128-element remainder."""
    xf = x.astype(jnp.float32)
    stairs = jnp.round(jnp.float32(_N1) * xf) * jnp.float32(_INV_N1)
    out = jnp.maximum(stairs * jnp.float32(OUT_SCALING), jnp.float32(CLAMP_MIN))
    return out.astype(x.dtype)


def _choose_row_tile(rows):
    """Single block when it fits (no wasted grid steps on single-TC chips);
    otherwise an even, balanced number of steps so v7x's two TensorCores both
    stay busy, with every block <= 4 MiB f32."""
    if rows <= _ROW_TILE_MAX:
        return rows                       # block dim == full array dim is allowed
    steps = pl.cdiv(rows, _ROW_TILE_MAX)
    if steps % 2:
        steps += 1                        # even step count -> megacore balance
    tile = pl.cdiv(rows, steps)
    tile = ((tile + _SUBLANES - 1) // _SUBLANES) * _SUBLANES   # sublane-align
    return tile


def safety_layer(x):
    """x: any shape (module assumes values in [0, 1]). Returns same shape/dtype."""
    orig_shape = x.shape
    orig_dtype = x.dtype
    n = x.size
    if n == 0:
        return x

    flat = x.reshape(-1)
    rows = n // _LANES
    rem = n - rows * _LANES

    out_bulk = None
    if rows > 0:
        bulk = flat[: rows * _LANES].reshape(rows, _LANES)
        row_tile = _choose_row_tile(rows)
        grid = (pl.cdiv(rows, row_tile),)
        bulk_n = rows * _LANES
        itemsize = jnp.dtype(orig_dtype).itemsize

        out_bulk = pl.pallas_call(
            _safety_kernel,
            out_shape=jax.ShapeDtypeStruct((rows, _LANES), orig_dtype),
            grid_spec=pltpu.PrefetchScalarGridSpec(
                num_scalar_prefetch=0,
                grid=grid,
                in_specs=[pl.BlockSpec((row_tile, _LANES), lambda i: (i, 0))],
                out_specs=pl.BlockSpec((row_tile, _LANES), lambda i: (i, 0)),
            ),
            compiler_params=pltpu.CompilerParams(
                dimension_semantics=("parallel",),
                vmem_limit_bytes=_VMEM_LIMIT_BYTES),
            cost_estimate=pl.CostEstimate(
                flops=4 * bulk_n,
                transcendentals=0,
                bytes_accessed=2 * bulk_n * itemsize),
        )(bulk)

    if rem:
        tail_out = _tail_forward(flat[rows * _LANES:])
        if out_bulk is not None:
            out_flat = jnp.concatenate([out_bulk.reshape(-1), tail_out])
        else:
            out_flat = tail_out
        return out_flat.reshape(orig_shape)

    return out_bulk.reshape(orig_shape)


def _reference(x):
    """Pure-JAX reference mirroring the PyTorch forward exactly (incl. soft term)."""
    n1 = N_STEPS - 1
    two_pi = 2.0 * math.pi
    xf = x.astype(jnp.float32)
    soft = (jnp.sin((n1 * xf - 0.5) * two_pi) + n1 * xf * two_pi) / (n1 * two_pi)
    stairs = jnp.round(n1 * xf) / n1
    out = (soft + stairs - soft) * OUT_SCALING
    return jnp.maximum(out, CLAMP_MIN).astype(x.dtype)


if __name__ == "__main__":
    key = jax.random.PRNGKey(0)

    # module assumes x in [0, 1]
    x = jax.random.uniform(key, (2, 4, 16, 16), dtype=jnp.float32)
    y = jax.block_until_ready(safety_layer(x))
    y_ref = _reference(x)
    assert y.shape == x.shape and y.dtype == x.dtype
    assert jnp.allclose(y, y_ref, rtol=1e-6, atol=1e-9), "mismatch vs reference"

    # partial last row-block (size multiple of 128 but not of the row tile)
    x2 = jax.random.uniform(jax.random.PRNGKey(1), (2, 4, 16, 20), dtype=jnp.float32)
    y2 = jax.block_until_ready(safety_layer(x2))
    y2_ref = _reference(x2)
    assert y2.shape == x2.shape and y2.dtype == x2.dtype
    assert jnp.allclose(y2, y2_ref, rtol=1e-6, atol=1e-9), "mismatch (partial block)"

    # size NOT a multiple of 128 -> bulk kernel + jnp tail path
    x3 = jax.random.uniform(jax.random.PRNGKey(2), (7, 37), dtype=jnp.float32)
    y3 = jax.block_until_ready(safety_layer(x3))
    y3_ref = _reference(x3)
    assert y3.shape == x3.shape and y3.dtype == x3.dtype
    assert jnp.allclose(y3, y3_ref, rtol=1e-6, atol=1e-9), "mismatch (tail path)"

    print("KERNEL_OK")
</pallas_src>

<mosaic_0001>
module attributes {stable_mosaic.version = 11 : i64} {
  func.func @_safety_kernel(%arg0: i32, %arg1: memref<16x128xf32, #tpu.memory_space<vmem>>, %arg2: memref<16x128xf32, #tpu.memory_space<vmem>>) attributes {dimension_semantics = [#tpu.dimension_semantics<parallel>], iteration_bounds = array<i64: 1>, scalar_prefetch = 0 : i64, scratch_operands = 0 : i64, tpu.core_type = #tpu.core_type<tc>, window_params = [{transform_indices = @transform_0, window_bounds = array<i64: 16, 128>}, {transform_indices = @transform_1, window_bounds = array<i64: 16, 128>}]} {
    %c0 = arith.constant 0 : index
    %c0_0 = arith.constant 0 : index
    %0 = vector.load %arg1[%c0, %c0_0] : memref<16x128xf32, #tpu.memory_space<vmem>>, vector<16x128xf32>
    %cst = arith.constant 4.000000e+00 : f32
    %1 = vector.broadcast %cst : f32 to vector<16x128xf32>
    %2 = arith.mulf %1, %0 : vector<16x128xf32>
    %3 = math.roundeven %2 : vector<16x128xf32>
    %cst_1 = arith.constant 2.500000e-01 : f32
    %4 = vector.broadcast %cst_1 : f32 to vector<16x128xf32>
    %5 = arith.mulf %3, %4 : vector<16x128xf32>
    %cst_2 = arith.constant 1.200000e-04 : f32
    %6 = vector.broadcast %cst_2 : f32 to vector<16x128xf32>
    %7 = arith.mulf %5, %6 : vector<16x128xf32>
    %cst_3 = arith.constant 1.000000e-32 : f32
    %8 = vector.broadcast %cst_3 : f32 to vector<16x128xf32>
    %9 = arith.maximumf %7, %8 : vector<16x128xf32>
    %c0_4 = arith.constant 0 : index
    %c0_5 = arith.constant 0 : index
    %10 = vector.load %arg2[%c0_4, %c0_5] : memref<16x128xf32, #tpu.memory_space<vmem>>, vector<16x128xf32>
    tpu.vector_store %arg2[%c0_4, %c0_5], %9 {strides = array<i32>} : memref<16x128xf32, #tpu.memory_space<vmem>>, vector<16x128xf32>,
    return
  }
  func.func @transform_0(%arg0: i32) -> (i32, i32) {
    %c0_i32 = arith.constant 0 : i32
    %c0_i32_0 = arith.constant 0 : i32
    return %arg0, %c0_i32 : i32, i32
  }
  func.func @transform_1(%arg0: i32) -> (i32, i32) {
    %c0_i32 = arith.constant 0 : i32
    %c0_i32_0 = arith.constant 0 : i32
    return %arg0, %c0_i32 : i32, i32
  }
}

</mosaic_0001>

<bundles_post_ra>
// kernel: tpu_custom_call.1
= control target key start
LH: loop header
LB: loop body
LE: loop exit
PB: predicated region body
PF: predicated region fallthrough
CT: control target
= control target key end

     0   :  { %6 = vsyncpa [#allocation3], 0  ;;  %s152_s0 = inlined_call_operand.hbm [shape: f32[16,128], index: 0, kind: input, shape index: {}]   ;;  %s153_s1 = inlined_call_operand.hbm [shape: f32[16,128], index: 1, kind: output, shape index: {}]  }
   0x1   :  { %7 = vsyncpa [#allocation4], 0  ;;  %s108_s6 = smov [#allocation2]   ;;  %s60_s10 = scalar_lea.hbm %s152_s0, 256 }
   0x2   :  { %s13_s7 = sshll.u32 %s108_s6, 4  ;;  %p61_p0 = scmp.ne.s32.totalorder %s152_s0, %s60_s10  ;;  %s14_s7 = int_to_ptr.vmem [resolvable:$true] %s13_s7 }
   0x3   :  { %p64_p1 = scmp.lt.u32.totalorder %s60_s10, %s152_s0 }
   0x5   :  { %p66_p2 = pnand %p64_p1, %p61_p0 }
   0x7   :  { %69 = shalt.err (!%p66_p2)
}
   0x8   :  { %s70_s15 = scalar_lea.vmem %s14_s7, 256  ;;  %p75_p4 = scmp.lt.s32.totalorder %s14_s7, %s14_s7 }
   0x9   :  { %p71_p3 = scmp.ne.s32.totalorder %s14_s7, %s70_s15  ;;  %p76_p5 = scmp.lt.s32.totalorder %s70_s15, %s70_s15 }
   0xb   :  { %p77_p6 = por %p76_p5, %p75_p4 }
   0xd   :  { %p78_p7 = pnand %p77_p6, %p71_p3 }
   0xf   :  { %81 = shalt.err (!%p78_p7)
}
  0x10   :  { %s109_s16 = smov 128   ;;  %s110_s17 = smov 8  }
  0x11   :  { %19 = dma.hbm_to_vmem [thread:$0]  %s152_s0, 256, %s14_s7, [#allocation3], %s109_s16, %s109_s16, %s110_s17  }
  0x12   :  { %104 = dma.done.wait [#allocation3], 256  }
  0x13   :  { %105 = vsyncadd [#allocation3], 4294967040  ;;  %v23_v0 = vld [vmem:[#allocation2] sm:$0xff]  ;;  %v24_v1 = vld [vmem:[#allocation2 + $0x8] sm:$0xff]  ;;  %s111_s20 = smov [#allocation5]  }
  0x14   :  { %v25_v2 = vmul.f32 4.0, %v23_v0  ;;  %v26_v3 = vmul.f32 4.0, %v24_v1  ;;  %s42_s21 = sshll.u32 %s111_s20, 4  ;;  %s43_s21 = int_to_ptr.vmem [resolvable:$true] %s42_s21 }
  0x15   :  { %s82_s0 = scalar_lea.vmem %s43_s21, 256  ;;  %p87_p9 = scmp.lt.s32.totalorder %s43_s21, %s43_s21 }
  0x16   :  { %v54_v4 = vround.rtne.f32 %v25_v2  ;;  %v55_v5 = vround.rtne.f32 %v26_v3  ;;  %p83_p8 = scmp.ne.s32.totalorder %s43_s21, %s82_s0  ;;  %p88_p10 = scmp.lt.s32.totalorder %s82_s0, %s82_s0 }
  0x18   :  { %v29_v6 = vmul.f32 0.25, %v54_v4  ;;  %v30_v7 = vmul.f32 0.25, %v55_v5  ;;  %p89_p11 = por %p88_p10, %p87_p9 }
  0x1a   :  { %v31_v8 = vmul.f32 0.00012, %v29_v6  ;;  %v32_v9 = vmul.f32 0.00012, %v30_v7  ;;  %p90_p12 = pnand %p89_p11, %p83_p8 }
  0x1c   :  { %v33_v10 = vmax.f32 %v31_v8, 1e-32  ;;  %v34_v11 = vmax.f32 %v32_v9, 1e-32 }
  0x1e   :  { %35 = vst [vmem:[#allocation5] sm:$0xff] %v33_v10  ;;  %36 = vst [vmem:[#allocation5 + $0x8] sm:$0xff] %v34_v11 }
  0x1f   :  { %93 = shalt.err (!%p90_p12)
}
  0x20   :  { %s94_s24 = scalar_lea.hbm %s153_s1, 256 }
  0x21   :  { %p95_p13 = scmp.ne.s32.totalorder %s153_s1, %s94_s24  ;;  %p98_p0 = scmp.lt.u32.totalorder %s94_s24, %s153_s1 }
  0x23   :  { %p100_p1 = pnand %p98_p0, %p95_p13 }
  0x25   :  { %103 = shalt.err (!%p100_p1)
}
  0x26   :  { %48 = dma.vmem_to_hbm [thread:$0]  %s43_s21, 256, %s153_s1, [#allocation4], %s109_s16, %s109_s16, %s110_s17  }
  0x27   :  { %106 = dma.done.wait [#allocation4], 256  }
  0x28   :  { %107 = vsyncadd [#allocation4], 4294967040 }
  0x29   :  { %52 = vsyncpa [#allocation3], 1 }
  0x2a   :  { %53 = vsyncpa [#allocation4], 1 }

</bundles_post_ra>
